<compile_context>
chip_gen: v5e
topology: v5e:2x2
jax: 0.10.0
libtpu: 0.0.40
codegen_flags: <defaults>
</compile_context>

<pallas_src>
import functools

import jax
import jax.numpy as jnp
from jax.experimental import pallas as pl
from jax.experimental.pallas import tpu as pltpu


# ---------------------------------------------------------------------------
# Shared GRU step (PyTorch nn.GRU / nn.GRUCell semantics, gates (r, z, n))
# given the precomputed input projection xp = x @ Wih_fused + bih.
# ---------------------------------------------------------------------------
def _gru_step(xp, h, whh_bf, bhh, H):
    hp = jnp.dot(h.astype(jnp.bfloat16), whh_bf,
                 preferred_element_type=jnp.float32) + bhh          # (N, 3H)
    r = jax.nn.sigmoid(xp[:, 0:H] + hp[:, 0:H])
    z = jax.nn.sigmoid(xp[:, H:2 * H] + hp[:, H:2 * H])
    n = jnp.tanh(xp[:, 2 * H:3 * H] + r * hp[:, 2 * H:3 * H])
    return (1.0 - z) * n + z * h


# ---------------------------------------------------------------------------
# Kernel 1: masked GRU sequence encoder (nn.GRU, batch_first, take hidden at
# the last real (non-pad) token: o[real_length - 1]).
# Single invocation: whole (T, N, E) slab resident in VMEM, x@Wih hoisted.
# ---------------------------------------------------------------------------
def gru_encoder_kernel(x_ref, len_ref, wih_ref, whh_ref, bih_ref, bhh_ref,
                       out_ref):
    T, N, E = x_ref.shape
    H = whh_ref.shape[0]

    x = x_ref[...]                                  # (T, N, E)
    lens = len_ref[...]                             # (N, 1) int32
    wih = wih_ref[...].astype(jnp.bfloat16)         # (E, 3H)
    whh = whh_ref[...].astype(jnp.bfloat16)         # (H, 3H)
    bih = bih_ref[...]                              # (1, 3H)
    bhh = bhh_ref[...]                              # (1, 3H)

    # Hoisted input-side projection: one (T*N, E) @ (E, 3H) matmul.
    xp = jnp.dot(x.reshape(T * N, E).astype(jnp.bfloat16), wih,
                 preferred_element_type=jnp.float32) + bih           # (T*N, 3H)
    xp = xp.reshape(T, N, 3 * H)

    h = jnp.zeros((N, H), jnp.float32)
    last = jnp.zeros((N, H), jnp.float32)
    for t in range(T):  # T is tiny & static -> fully unrolled recurrence
        h_new = _gru_step(xp[t], h, whh, bhh, H)
        # keep hidden state of the last real token (o[real_length - 1])
        mask = (t < lens).astype(jnp.float32)                         # (N, 1)
        last = mask * h_new + (1.0 - mask) * last
        h = h_new
    out_ref[...] = last


def gru_encode(x_tne, lengths, wih, whh, bih, bhh):
    """x_tne: (T, N, E) time-major embedded sequence; lengths: (N, 1) int32."""
    T, N, E = x_tne.shape
    H = whh.shape[0]
    Np = ((N + 7) // 8) * 8                          # sublane-align rows
    if Np != N:
        x_tne = jnp.pad(x_tne, ((0, 0), (0, Np - N), (0, 0)))
        lengths = jnp.pad(lengths, ((0, Np - N), (0, 0)))
    out = pl.pallas_call(
        gru_encoder_kernel,
        out_shape=jax.ShapeDtypeStruct((Np, H), jnp.float32),
        in_specs=[pl.BlockSpec(memory_space=pltpu.MemorySpace.VMEM)] * 6,
        out_specs=pl.BlockSpec(memory_space=pltpu.MemorySpace.VMEM),
    )(x_tne, lengths, wih, whh, bih, bhh)
    return out[:N]


# ---------------------------------------------------------------------------
# Kernel 2: episodic memory + answer decoder.
# All hidden-state-independent projections are hoisted/batched; output is a
# single lane-contiguous (B*num_decode, O) slab.
# ---------------------------------------------------------------------------
def dmn_core_kernel(episodes, num_decode,
                    facts_ref, q_ref, y0_ref,
                    gw1_ref, gb1_ref, gw2_ref, gb2_ref,
                    awih_ref, awhh_ref, abih_ref, abhh_ref,
                    mwih_ref, mwhh_ref, mbih_ref, mbhh_ref,
                    dwih_ref, dwhh_ref, dbih_ref, dbhh_ref,
                    fcw_ref, fcb_ref, out_ref):
    T_C, B, H = facts_ref.shape

    facts = facts_ref[...]                        # (T_C, B, H)
    q = q_ref[...]                                # (B, H)
    y0 = y0_ref[...]                              # (B, E)  <s> embedding (constant, as in PyTorch)

    gw1 = gw1_ref[...].astype(jnp.bfloat16)       # (4H, H)
    gb1 = gb1_ref[...]                            # (1, H)
    gw2 = gw2_ref[...]                            # (1, H)  second gate Linear as a row
    gb2 = gb2_ref[...]                            # (1, 1)
    awih = awih_ref[...].astype(jnp.bfloat16)     # (H, 3H)
    awhh = awhh_ref[...].astype(jnp.bfloat16)
    abih = abih_ref[...]
    abhh = abhh_ref[...]
    mwih = mwih_ref[...].astype(jnp.bfloat16)
    mwhh = mwhh_ref[...].astype(jnp.bfloat16)
    mbih = mbih_ref[...]
    mbhh = mbhh_ref[...]
    dwih = dwih_ref[...].astype(jnp.bfloat16)     # (E+H, 3H)
    dwhh = dwhh_ref[...].astype(jnp.bfloat16)
    dbih = dbih_ref[...]
    dbhh = dbhh_ref[...]
    fcw = fcw_ref[...].astype(jnp.bfloat16)       # (H, O)
    fcb = fcb_ref[...]                            # (1, O)

    TB = T_C * B
    facts_flat = facts.reshape(TB, H)

    # Hoisted: attention-GRU input projection for all facts, once.
    facts_proj = (jnp.dot(facts_flat.astype(jnp.bfloat16), awih,
                          preferred_element_type=jnp.float32) + abih)  # (TB, 3H)
    facts_proj = facts_proj.reshape(T_C, B, 3 * H)

    # Hoisted: question-only gate features (do not depend on memory).
    cq = (facts * q[None, :, :]).reshape(TB, H)
    aq = jnp.abs(facts - q[None, :, :]).reshape(TB, H)

    memory = q
    for _ep in range(episodes):
        # Batched gate MLP for all timesteps (depends on facts/q/memory only).
        cm = (facts * memory[None, :, :]).reshape(TB, H)
        am = jnp.abs(facts - memory[None, :, :]).reshape(TB, H)
        zflat = jnp.concatenate([cq, cm, aq, am], axis=1)            # (TB, 4H)
        g1 = jnp.tanh(jnp.dot(zflat.astype(jnp.bfloat16), gw1,
                              preferred_element_type=jnp.float32) + gb1)  # (TB, H)
        # (H, 1) projection as VPU mul + lane reduce (no 1-wide MXU pass).
        g = jax.nn.sigmoid(jnp.sum(g1 * gw2, axis=-1, keepdims=True) + gb2)  # (TB, 1)
        g = g.reshape(T_C, B, 1)

        # Serial attention-GRU recurrence (only h @ Whh left inside).
        hidden = jnp.zeros((B, H), jnp.float32)
        for t in range(T_C):
            h_attn = _gru_step(facts_proj[t], hidden, awhh, abhh, H)
            hidden = g[t] * h_attn + (1.0 - g[t]) * hidden

        # Memory GRU cell.
        mem_xp = jnp.dot(hidden.astype(jnp.bfloat16), mwih,
                         preferred_element_type=jnp.float32) + mbih
        memory = _gru_step(mem_xp, memory, mwhh, mbhh, H)

    # Answer decoder: dec_in is constant across decode steps -> hoist its proj.
    dec_in = jnp.concatenate([y0, q], axis=1)                        # (B, E+H)
    dec_xp = jnp.dot(dec_in.astype(jnp.bfloat16), dwih,
                     preferred_element_type=jnp.float32) + dbih      # (B, 3H)
    answer_hidden = memory
    hiddens = []
    for _t in range(num_decode):
        answer_hidden = _gru_step(dec_xp, answer_hidden, dwhh, dbhh, H)
        hiddens.append(answer_hidden)

    # Batched answer_fc + single contiguous store.
    # Row ordering matches torch.cat(decodes, 1).view(B*num_decode, -1):
    # row = b * num_decode + t.
    hstack = jnp.stack(hiddens, axis=1).reshape(B * num_decode, H)   # (B*ND, H)
    logits = jnp.dot(hstack.astype(jnp.bfloat16), fcw,
                     preferred_element_type=jnp.float32) + fcb       # (B*ND, O)
    out_ref[...] = logits


def dmn_core(enc_facts, enc_q, y0, params, episodes, num_decode):
    t_c, b, h = enc_facts.shape
    out_dim = params["fc_w"].shape[1]
    bp = ((b + 7) // 8) * 8                          # sublane-align the batch
    if bp != b:
        enc_facts = jnp.pad(enc_facts, ((0, 0), (0, bp - b), (0, 0)))
        enc_q = jnp.pad(enc_q, ((0, bp - b), (0, 0)))
        y0 = jnp.pad(y0, ((0, bp - b), (0, 0)))
    args = (enc_facts, enc_q, y0,
            params["gw1"], params["gb1"], params["gw2"], params["gb2"],
            params["a_wih"], params["a_whh"], params["a_bih"], params["a_bhh"],
            params["m_wih"], params["m_whh"], params["m_bih"], params["m_bhh"],
            params["d_wih"], params["d_whh"], params["d_bih"], params["d_bhh"],
            params["fc_w"], params["fc_b"])
    kernel = functools.partial(dmn_core_kernel, episodes, num_decode)
    out = pl.pallas_call(
        kernel,
        out_shape=jax.ShapeDtypeStruct((bp * num_decode, out_dim), jnp.float32),
        in_specs=[pl.BlockSpec(memory_space=pltpu.MemorySpace.VMEM)] * len(args),
        out_specs=pl.BlockSpec(memory_space=pltpu.MemorySpace.VMEM),
    )(*args)
    # Real rows are the first b*num_decode (row = b_idx * num_decode + t).
    return out[:b * num_decode]
    # TODO(synk): at real vocab sizes, tile fc_w over the output dim (grid) and
    # add a batch-parallel grid axis for v7x's two TensorCores.


# ---------------------------------------------------------------------------
# Full DMN forward (JAX glue around the kernels)
# ---------------------------------------------------------------------------
def dmn_forward(params, fact_tokens, fact_lens, q_tokens, q_lens,
                num_decode, episodes=3):
    embed = params["embed"]
    B, T_C, T_I = fact_tokens.shape
    E = embed.shape[1]
    H = params["in_whh"].shape[0]

    # ---- fact encoder (input_gru), one GRU run per (batch, fact) row -------
    f_emb = embed[fact_tokens]                                    # (B, T_C, T_I, E)
    f_emb = f_emb.reshape(B * T_C, T_I, E).transpose(1, 0, 2)     # (T_I, B*T_C, E)
    f_len = fact_lens.reshape(B * T_C, 1).astype(jnp.int32)
    enc_facts = gru_encode(f_emb, f_len,
                           params["in_wih"], params["in_whh"],
                           params["in_bih"], params["in_bhh"])     # (B*T_C, H)
    enc_facts = enc_facts.reshape(B, T_C, H).transpose(1, 0, 2)    # (T_C, B, H)

    # ---- question encoder (question_gru) ------------------------------------
    q_emb = embed[q_tokens].transpose(1, 0, 2)                     # (T_Q, B, E)
    enc_q = gru_encode(q_emb, q_lens.reshape(B, 1).astype(jnp.int32),
                       params["q_wih"], params["q_whh"],
                       params["q_bih"], params["q_bhh"])           # (B, H)

    # ---- start-of-sequence embedding for the answer decoder -----------------
    y0 = jnp.broadcast_to(embed[2], (B, E))                        # <s> == index 2

    # ---- episodic memory + answer decoding (single Pallas kernel) -----------
    return dmn_core(enc_facts, enc_q, y0, params, episodes, num_decode)


# ---------------------------------------------------------------------------
# Main: deterministic params + data at small shapes
# ---------------------------------------------------------------------------
if __name__ == "__main__":
    B, T_C, T_I, T_Q = 2, 3, 6, 5
    VOCAB, E, H, OUT = 20, 16, 32, 10
    NUM_DECODE, EPISODES = 3, 3

    key = jax.random.PRNGKey(0)
    keys = jax.random.split(key, 40)
    _ki = iter(keys)

    def p(shape, scale=0.1):
        return scale * jax.random.normal(next(_ki), shape, dtype=jnp.float32)

    params = {}
    # nn.Embedding(input_size, embed_size, padding_idx=0) -> pad row is zero
    params["embed"] = p((VOCAB, E)).at[0].set(0.0)
    # input_gru / question_gru: fused gate weights, blocks (r, z, n) along 3H
    for pre, in_dim in (("in", E), ("q", E)):
        params[f"{pre}_wih"] = p((in_dim, 3 * H))
        params[f"{pre}_whh"] = p((H, 3 * H))
        params[f"{pre}_bih"] = p((1, 3 * H))
        params[f"{pre}_bhh"] = p((1, 3 * H))
    # gate: Linear(4H, H) -> Tanh -> Linear(H, 1) -> Sigmoid
    params["gw1"] = p((4 * H, H)); params["gb1"] = p((1, H))
    params["gw2"] = p((1, H));     params["gb2"] = p((1, 1))
    # attention / memory GRU cells (H -> H), fused gate layout
    for pre in ("a", "m"):
        params[f"{pre}_wih"] = p((H, 3 * H))
        params[f"{pre}_whh"] = p((H, 3 * H))
        params[f"{pre}_bih"] = p((1, 3 * H))
        params[f"{pre}_bhh"] = p((1, 3 * H))
    # answer GRU cell (E + H -> H), input is cat([y_t_1, encoded_question])
    params["d_wih"] = p((3 * H,)).reshape(1, 3 * H) * 0 + p((E + H, 3 * H))
    params["d_wih"] = p((E + H, 3 * H))
    params["d_whh"] = p((H, 3 * H))
    params["d_bih"] = p((1, 3 * H))
    params["d_bhh"] = p((1, 3 * H))
    # answer_fc: Linear(H, output_size), bias filled with 0 (as in init_weight)
    params["fc_w"] = p((H, OUT))
    params["fc_b"] = jnp.zeros((1, OUT), jnp.float32)

    # ---- synthetic padded inputs (mask value 0 == real token in PyTorch) ----
    fact_lens = jax.random.randint(next(_ki), (B, T_C), 2, T_I + 1)
    q_lens = jax.random.randint(next(_ki), (B,), 2, T_Q + 1)
    fact_tokens = jax.random.randint(next(_ki), (B, T_C, T_I), 1, VOCAB)
    q_tokens = jax.random.randint(next(_ki), (B, T_Q), 1, VOCAB)
    fact_tokens = jnp.where(jnp.arange(T_I)[None, None, :] < fact_lens[..., None],
                            fact_tokens, 0)
    q_tokens = jnp.where(jnp.arange(T_Q)[None, :] < q_lens[:, None], q_tokens, 0)

    # TODO(synk): dropout (is_training=True path) not implemented; inference path only.
    out = dmn_forward(params, fact_tokens, fact_lens, q_tokens, q_lens,
                      num_decode=NUM_DECODE, episodes=EPISODES)
    out = jax.block_until_ready(out)

    assert out.shape == (B * NUM_DECODE, OUT), out.shape
    assert bool(jnp.all(jnp.isfinite(out)))
    print("KERNEL_OK")
</pallas_src>

<mosaic_0001>
module attributes {stable_mosaic.version = 11 : i64} {
  func.func @gru_encoder_kernel(%arg0: memref<6x8x16xf32, #tpu.memory_space<vmem>>, %arg1: memref<8x1xi32, #tpu.memory_space<vmem>>, %arg2: memref<16x96xf32, #tpu.memory_space<vmem>>, %arg3: memref<32x96xf32, #tpu.memory_space<vmem>>, %arg4: memref<1x96xf32, #tpu.memory_space<vmem>>, %arg5: memref<1x96xf32, #tpu.memory_space<vmem>>, %arg6: memref<8x32xf32, #tpu.memory_space<vmem>>) attributes {dimension_semantics = [], scalar_prefetch = 0 : i64, scratch_operands = 0 : i64, tpu.core_type = #tpu.core_type<tc>} {
    %c0 = arith.constant 0 : index
    %c0_0 = arith.constant 0 : index
    %c0_1 = arith.constant 0 : index
    %0 = vector.load %arg0[%c0, %c0_0, %c0_1] : memref<6x8x16xf32, #tpu.memory_space<vmem>>, vector<6x8x16xf32>
    %c0_2 = arith.constant 0 : index
    %c0_3 = arith.constant 0 : index
    %1 = vector.load %arg1[%c0_2, %c0_3] : memref<8x1xi32, #tpu.memory_space<vmem>>, vector<8x1xi32>
    %c0_4 = arith.constant 0 : index
    %c0_5 = arith.constant 0 : index
    %2 = vector.load %arg2[%c0_4, %c0_5] : memref<16x96xf32, #tpu.memory_space<vmem>>, vector<16x96xf32>
    %3 = arith.truncf %2 : vector<16x96xf32> to vector<16x96xbf16>
    %c0_6 = arith.constant 0 : index
    %c0_7 = arith.constant 0 : index
    %4 = vector.load %arg3[%c0_6, %c0_7] : memref<32x96xf32, #tpu.memory_space<vmem>>, vector<32x96xf32>
    %5 = arith.truncf %4 : vector<32x96xf32> to vector<32x96xbf16>
    %c0_8 = arith.constant 0 : index
    %c0_9 = arith.constant 0 : index
    %6 = vector.load %arg4[%c0_8, %c0_9] : memref<1x96xf32, #tpu.memory_space<vmem>>, vector<1x96xf32>
    %c0_10 = arith.constant 0 : index
    %c0_11 = arith.constant 0 : index
    %7 = vector.load %arg5[%c0_10, %c0_11] : memref<1x96xf32, #tpu.memory_space<vmem>>, vector<1x96xf32>
    %8 = vector.shape_cast %0 : vector<6x8x16xf32> to vector<48x16xf32>
    %9 = arith.truncf %8 : vector<48x16xf32> to vector<48x16xbf16>
    %cst = arith.constant dense<0.000000e+00> : vector<48x96xf32>
    %10 = tpu.matmul %9, %3, %cst {dimension_numbers = #tpu.dot_dimension_numbers<[1], [0], [0], [1], [0, 0, 1, 1], [], []>} : vector<48x16xbf16>, vector<16x96xbf16>, vector<48x96xf32> -> vector<48x96xf32>
    %11 = vector.broadcast %6 : vector<1x96xf32> to vector<48x96xf32>
    %12 = arith.addf %10, %11 : vector<48x96xf32>
    %13 = vector.shape_cast %12 : vector<48x96xf32> to vector<6x8x96xf32>
    %cst_12 = arith.constant 0.000000e+00 : f32
    %14 = vector.broadcast %cst_12 : f32 to vector<8x32xf32>
    %cst_13 = arith.constant 0.000000e+00 : f32
    %15 = vector.broadcast %cst_13 : f32 to vector<8x32xf32>
    %16 = vector.extract_strided_slice %13 {offsets = [0, 0, 0], sizes = [1, 8, 96], strides = [1, 1, 1]} : vector<6x8x96xf32> to vector<1x8x96xf32>
    %17 = vector.shape_cast %16 : vector<1x8x96xf32> to vector<8x96xf32>
    %18 = arith.truncf %14 : vector<8x32xf32> to vector<8x32xbf16>
    %cst_14 = arith.constant dense<0.000000e+00> : vector<8x96xf32>
    %19 = tpu.matmul %18, %5, %cst_14 {dimension_numbers = #tpu.dot_dimension_numbers<[1], [0], [0], [1], [0, 0, 1, 1], [], []>} : vector<8x32xbf16>, vector<32x96xbf16>, vector<8x96xf32> -> vector<8x96xf32>
    %20 = vector.broadcast %7 : vector<1x96xf32> to vector<8x96xf32>
    %21 = arith.addf %19, %20 : vector<8x96xf32>
    %22 = vector.extract_strided_slice %17 {offsets = [0, 0], sizes = [8, 32], strides = [1, 1]} : vector<8x96xf32> to vector<8x32xf32>
    %23 = vector.extract_strided_slice %21 {offsets = [0, 0], sizes = [8, 32], strides = [1, 1]} : vector<8x96xf32> to vector<8x32xf32>
    %24 = arith.addf %22, %23 : vector<8x32xf32>
    %25 = arith.negf %24 : vector<8x32xf32>
    %26 = math.exp %25 : vector<8x32xf32>
    %cst_15 = arith.constant 1.000000e+00 : f32
    %27 = vector.broadcast %cst_15 : f32 to vector<8x32xf32>
    %28 = arith.addf %27, %26 : vector<8x32xf32>
    %29 = arith.divf %27, %28 : vector<8x32xf32>
    %30 = vector.extract_strided_slice %17 {offsets = [0, 32], sizes = [8, 32], strides = [1, 1]} : vector<8x96xf32> to vector<8x32xf32>
    %31 = vector.extract_strided_slice %21 {offsets = [0, 32], sizes = [8, 32], strides = [1, 1]} : vector<8x96xf32> to vector<8x32xf32>
    %32 = arith.addf %30, %31 : vector<8x32xf32>
    %33 = arith.negf %32 : vector<8x32xf32>
    %34 = math.exp %33 : vector<8x32xf32>
    %cst_16 = arith.constant 1.000000e+00 : f32
    %35 = vector.broadcast %cst_16 : f32 to vector<8x32xf32>
    %36 = arith.addf %35, %34 : vector<8x32xf32>
    %37 = arith.divf %35, %36 : vector<8x32xf32>
    %38 = vector.extract_strided_slice %17 {offsets = [0, 64], sizes = [8, 32], strides = [1, 1]} : vector<8x96xf32> to vector<8x32xf32>
    %39 = vector.extract_strided_slice %21 {offsets = [0, 64], sizes = [8, 32], strides = [1, 1]} : vector<8x96xf32> to vector<8x32xf32>
    %40 = arith.mulf %29, %39 : vector<8x32xf32>
    %41 = arith.addf %38, %40 : vector<8x32xf32>
    %42 = math.tanh %41 : vector<8x32xf32>
    %cst_17 = arith.constant 1.000000e+00 : f32
    %43 = vector.broadcast %cst_17 : f32 to vector<8x32xf32>
    %44 = arith.subf %43, %37 : vector<8x32xf32>
    %45 = arith.mulf %44, %42 : vector<8x32xf32>
    %46 = arith.mulf %37, %14 : vector<8x32xf32>
    %47 = arith.addf %45, %46 : vector<8x32xf32>
    %c0_i32 = arith.constant 0 : i32
    %48 = vector.broadcast %c0_i32 : i32 to vector<8x1xi32>
    %49 = arith.cmpi sgt, %1, %48 : vector<8x1xi32>
    %50 = arith.extui %49 : vector<8x1xi1> to vector<8x1xi32>
    %51 = arith.sitofp %50 : vector<8x1xi32> to vector<8x1xf32>
    %52 = vector.broadcast %51 : vector<8x1xf32> to vector<8x32xf32>
    %53 = arith.mulf %52, %47 : vector<8x32xf32>
    %cst_18 = arith.constant 1.000000e+00 : f32
    %54 = vector.broadcast %cst_18 : f32 to vector<8x1xf32>
    %55 = arith.subf %54, %51 : vector<8x1xf32>
    %56 = vector.broadcast %55 : vector<8x1xf32> to vector<8x32xf32>
    %57 = arith.mulf %56, %15 : vector<8x32xf32>
    %58 = arith.addf %53, %57 : vector<8x32xf32>
    %59 = vector.extract_strided_slice %13 {offsets = [1, 0, 0], sizes = [1, 8, 96], strides = [1, 1, 1]} : vector<6x8x96xf32> to vector<1x8x96xf32>
    %60 = vector.shape_cast %59 : vector<1x8x96xf32> to vector<8x96xf32>
    %61 = arith.truncf %47 : vector<8x32xf32> to vector<8x32xbf16>
    %cst_19 = arith.constant dense<0.000000e+00> : vector<8x96xf32>
    %62 = tpu.matmul %61, %5, %cst_19 {dimension_numbers = #tpu.dot_dimension_numbers<[1], [0], [0], [1], [0, 0, 1, 1], [], []>} : vector<8x32xbf16>, vector<32x96xbf16>, vector<8x96xf32> -> vector<8x96xf32>
    %63 = vector.broadcast %7 : vector<1x96xf32> to vector<8x96xf32>
    %64 = arith.addf %62, %63 : vector<8x96xf32>
    %65 = vector.extract_strided_slice %60 {offsets = [0, 0], sizes = [8, 32], strides = [1, 1]} : vector<8x96xf32> to vector<8x32xf32>
    %66 = vector.extract_strided_slice %64 {offsets = [0, 0], sizes = [8, 32], strides = [1, 1]} : vector<8x96xf32> to vector<8x32xf32>
    %67 = arith.addf %65, %66 : vector<8x32xf32>
    %68 = arith.negf %67 : vector<8x32xf32>
    %69 = math.exp %68 : vector<8x32xf32>
    %cst_20 = arith.constant 1.000000e+00 : f32
    %70 = vector.broadcast %cst_20 : f32 to vector<8x32xf32>
    %71 = arith.addf %70, %69 : vector<8x32xf32>
    %72 = arith.divf %70, %71 : vector<8x32xf32>
    %73 = vector.extract_strided_slice %60 {offsets = [0, 32], sizes = [8, 32], strides = [1, 1]} : vector<8x96xf32> to vector<8x32xf32>
    %74 = vector.extract_strided_slice %64 {offsets = [0, 32], sizes = [8, 32], strides = [1, 1]} : vector<8x96xf32> to vector<8x32xf32>
    %75 = arith.addf %73, %74 : vector<8x32xf32>
    %76 = arith.negf %75 : vector<8x32xf32>
    %77 = math.exp %76 : vector<8x32xf32>
    %cst_21 = arith.constant 1.000000e+00 : f32
    %78 = vector.broadcast %cst_21 : f32 to vector<8x32xf32>
    %79 = arith.addf %78, %77 : vector<8x32xf32>
    %80 = arith.divf %78, %79 : vector<8x32xf32>
    %81 = vector.extract_strided_slice %60 {offsets = [0, 64], sizes = [8, 32], strides = [1, 1]} : vector<8x96xf32> to vector<8x32xf32>
    %82 = vector.extract_strided_slice %64 {offsets = [0, 64], sizes = [8, 32], strides = [1, 1]} : vector<8x96xf32> to vector<8x32xf32>
    %83 = arith.mulf %72, %82 : vector<8x32xf32>
    %84 = arith.addf %81, %83 : vector<8x32xf32>
    %85 = math.tanh %84 : vector<8x32xf32>
    %cst_22 = arith.constant 1.000000e+00 : f32
    %86 = vector.broadcast %cst_22 : f32 to vector<8x32xf32>
    %87 = arith.subf %86, %80 : vector<8x32xf32>
    %88 = arith.mulf %87, %85 : vector<8x32xf32>
    %89 = arith.mulf %80, %47 : vector<8x32xf32>
    %90 = arith.addf %88, %89 : vector<8x32xf32>
    %c1_i32 = arith.constant 1 : i32
    %91 = vector.broadcast %c1_i32 : i32 to vector<8x1xi32>
    %92 = arith.cmpi sgt, %1, %91 : vector<8x1xi32>
    %93 = arith.extui %92 : vector<8x1xi1> to vector<8x1xi32>
    %94 = arith.sitofp %93 : vector<8x1xi32> to vector<8x1xf32>
    %95 = vector.broadcast %94 : vector<8x1xf32> to vector<8x32xf32>
    %96 = arith.mulf %95, %90 : vector<8x32xf32>
    %cst_23 = arith.constant 1.000000e+00 : f32
    %97 = vector.broadcast %cst_23 : f32 to vector<8x1xf32>
    %98 = arith.subf %97, %94 : vector<8x1xf32>
    %99 = vector.broadcast %98 : vector<8x1xf32> to vector<8x32xf32>
    %100 = arith.mulf %99, %58 : vector<8x32xf32>
    %101 = arith.addf %96, %100 : vector<8x32xf32>
    %102 = vector.extract_strided_slice %13 {offsets = [2, 0, 0], sizes = [1, 8, 96], strides = [1, 1, 1]} : vector<6x8x96xf32> to vector<1x8x96xf32>
    %103 = vector.shape_cast %102 : vector<1x8x96xf32> to vector<8x96xf32>
    %104 = arith.truncf %90 : vector<8x32xf32> to vector<8x32xbf16>
    %cst_24 = arith.constant dense<0.000000e+00> : vector<8x96xf32>
    %105 = tpu.matmul %104, %5, %cst_24 {dimension_numbers = #tpu.dot_dimension_numbers<[1], [0], [0], [1], [0, 0, 1, 1], [], []>} : vector<8x32xbf16>, vector<32x96xbf16>, vector<8x96xf32> -> vector<8x96xf32>
    %106 = vector.broadcast %7 : vector<1x96xf32> to vector<8x96xf32>
    %107 = arith.addf %105, %106 : vector<8x96xf32>
    %108 = vector.extract_strided_slice %103 {offsets = [0, 0], sizes = [8, 32], strides = [1, 1]} : vector<8x96xf32> to vector<8x32xf32>
    %109 = vector.extract_strided_slice %107 {offsets = [0, 0], sizes = [8, 32], strides = [1, 1]} : vector<8x96xf32> to vector<8x32xf32>
    %110 = arith.addf %108, %109 : vector<8x32xf32>
    %111 = arith.negf %110 : vector<8x32xf32>
    %112 = math.exp %111 : vector<8x32xf32>
    %cst_25 = arith.constant 1.000000e+00 : f32
    %113 = vector.broadcast %cst_25 : f32 to vector<8x32xf32>
    %114 = arith.addf %113, %112 : vector<8x32xf32>
    %115 = arith.divf %113, %114 : vector<8x32xf32>
    %116 = vector.extract_strided_slice %103 {offsets = [0, 32], sizes = [8, 32], strides = [1, 1]} : vector<8x96xf32> to vector<8x32xf32>
    %117 = vector.extract_strided_slice %107 {offsets = [0, 32], sizes = [8, 32], strides = [1, 1]} : vector<8x96xf32> to vector<8x32xf32>
    %118 = arith.addf %116, %117 : vector<8x32xf32>
    %119 = arith.negf %118 : vector<8x32xf32>
    %120 = math.exp %119 : vector<8x32xf32>
    %cst_26 = arith.constant 1.000000e+00 : f32
    %121 = vector.broadcast %cst_26 : f32 to vector<8x32xf32>
    %122 = arith.addf %121, %120 : vector<8x32xf32>
    %123 = arith.divf %121, %122 : vector<8x32xf32>
    %124 = vector.extract_strided_slice %103 {offsets = [0, 64], sizes = [8, 32], strides = [1, 1]} : vector<8x96xf32> to vector<8x32xf32>
    %125 = vector.extract_strided_slice %107 {offsets = [0, 64], sizes = [8, 32], strides = [1, 1]} : vector<8x96xf32> to vector<8x32xf32>
    %126 = arith.mulf %115, %125 : vector<8x32xf32>
    %127 = arith.addf %124, %126 : vector<8x32xf32>
    %128 = math.tanh %127 : vector<8x32xf32>
    %cst_27 = arith.constant 1.000000e+00 : f32
    %129 = vector.broadcast %cst_27 : f32 to vector<8x32xf32>
    %130 = arith.subf %129, %123 : vector<8x32xf32>
    %131 = arith.mulf %130, %128 : vector<8x32xf32>
    %132 = arith.mulf %123, %90 : vector<8x32xf32>
    %133 = arith.addf %131, %132 : vector<8x32xf32>
    %c2_i32 = arith.constant 2 : i32
    %134 = vector.broadcast %c2_i32 : i32 to vector<8x1xi32>
    %135 = arith.cmpi sgt, %1, %134 : vector<8x1xi32>
    %136 = arith.extui %135 : vector<8x1xi1> to vector<8x1xi32>
    %137 = arith.sitofp %136 : vector<8x1xi32> to vector<8x1xf32>
    %138 = vector.broadcast %137 : vector<8x1xf32> to vector<8x32xf32>
    %139 = arith.mulf %138, %133 : vector<8x32xf32>
    %cst_28 = arith.constant 1.000000e+00 : f32
    %140 = vector.broadcast %cst_28 : f32 to vector<8x1xf32>
    %141 = arith.subf %140, %137 : vector<8x1xf32>
    %142 = vector.broadcast %141 : vector<8x1xf32> to vector<8x32xf32>
    %143 = arith.mulf %142, %101 : vector<8x32xf32>
    %144 = arith.addf %139, %143 : vector<8x32xf32>
    %145 = vector.extract_strided_slice %13 {offsets = [3, 0, 0], sizes = [1, 8, 96], strides = [1, 1, 1]} : vector<6x8x96xf32> to vector<1x8x96xf32>
    %146 = vector.shape_cast %145 : vector<1x8x96xf32> to vector<8x96xf32>
    %147 = arith.truncf %133 : vector<8x32xf32> to vector<8x32xbf16>
    %cst_29 = arith.constant dense<0.000000e+00> : vector<8x96xf32>
    %148 = tpu.matmul %147, %5, %cst_29 {dimension_numbers = #tpu.dot_dimension_numbers<[1], [0], [0], [1], [0, 0, 1, 1], [], []>} : vector<8x32xbf16>, vector<32x96xbf16>, vector<8x96xf32> -> vector<8x96xf32>
    %149 = vector.broadcast %7 : vector<1x96xf32> to vector<8x96xf32>
    %150 = arith.addf %148, %149 : vector<8x96xf32>
    %151 = vector.extract_strided_slice %146 {offsets = [0, 0], sizes = [8, 32], strides = [1, 1]} : vector<8x96xf32> to vector<8x32xf32>
    %152 = vector.extract_strided_slice %150 {offsets = [0, 0], sizes = [8, 32], strides = [1, 1]} : vector<8x96xf32> to vector<8x32xf32>
    %153 = arith.addf %151, %152 : vector<8x32xf32>
    %154 = arith.negf %153 : vector<8x32xf32>
    %155 = math.exp %154 : vector<8x32xf32>
    %cst_30 = arith.constant 1.000000e+00 : f32
    %156 = vector.broadcast %cst_30 : f32 to vector<8x32xf32>
    %157 = arith.addf %156, %155 : vector<8x32xf32>
    %158 = arith.divf %156, %157 : vector<8x32xf32>
    %159 = vector.extract_strided_slice %146 {offsets = [0, 32], sizes = [8, 32], strides = [1, 1]} : vector<8x96xf32> to vector<8x32xf32>
    %160 = vector.extract_strided_slice %150 {offsets = [0, 32], sizes = [8, 32], strides = [1, 1]} : vector<8x96xf32> to vector<8x32xf32>
    %161 = arith.addf %159, %160 : vector<8x32xf32>
    %162 = arith.negf %161 : vector<8x32xf32>
    %163 = math.exp %162 : vector<8x32xf32>
    %cst_31 = arith.constant 1.000000e+00 : f32
    %164 = vector.broadcast %cst_31 : f32 to vector<8x32xf32>
    %165 = arith.addf %164, %163 : vector<8x32xf32>
    %166 = arith.divf %164, %165 : vector<8x32xf32>
    %167 = vector.extract_strided_slice %146 {offsets = [0, 64], sizes = [8, 32], strides = [1, 1]} : vector<8x96xf32> to vector<8x32xf32>
    %168 = vector.extract_strided_slice %150 {offsets = [0, 64], sizes = [8, 32], strides = [1, 1]} : vector<8x96xf32> to vector<8x32xf32>
    %169 = arith.mulf %158, %168 : vector<8x32xf32>
    %170 = arith.addf %167, %169 : vector<8x32xf32>
    %171 = math.tanh %170 : vector<8x32xf32>
    %cst_32 = arith.constant 1.000000e+00 : f32
    %172 = vector.broadcast %cst_32 : f32 to vector<8x32xf32>
    %173 = arith.subf %172, %166 : vector<8x32xf32>
    %174 = arith.mulf %173, %171 : vector<8x32xf32>
    %175 = arith.mulf %166, %133 : vector<8x32xf32>
    %176 = arith.addf %174, %175 : vector<8x32xf32>
    %c3_i32 = arith.constant 3 : i32
    %177 = vector.broadcast %c3_i32 : i32 to vector<8x1xi32>
    %178 = arith.cmpi sgt, %1, %177 : vector<8x1xi32>
    %179 = arith.extui %178 : vector<8x1xi1> to vector<8x1xi32>
    %180 = arith.sitofp %179 : vector<8x1xi32> to vector<8x1xf32>
    %181 = vector.broadcast %180 : vector<8x1xf32> to vector<8x32xf32>
    %182 = arith.mulf %181, %176 : vector<8x32xf32>
    %cst_33 = arith.constant 1.000000e+00 : f32
    %183 = vector.broadcast %cst_33 : f32 to vector<8x1xf32>
    %184 = arith.subf %183, %180 : vector<8x1xf32>
    %185 = vector.broadcast %184 : vector<8x1xf32> to vector<8x32xf32>
    %186 = arith.mulf %185, %144 : vector<8x32xf32>
    %187 = arith.addf %182, %186 : vector<8x32xf32>
    %188 = vector.extract_strided_slice %13 {offsets = [4, 0, 0], sizes = [1, 8, 96], strides = [1, 1, 1]} : vector<6x8x96xf32> to vector<1x8x96xf32>
    %189 = vector.shape_cast %188 : vector<1x8x96xf32> to vector<8x96xf32>
    %190 = arith.truncf %176 : vector<8x32xf32> to vector<8x32xbf16>
    %cst_34 = arith.constant dense<0.000000e+00> : vector<8x96xf32>
    %191 = tpu.matmul %190, %5, %cst_34 {dimension_numbers = #tpu.dot_dimension_numbers<[1], [0], [0], [1], [0, 0, 1, 1], [], []>} : vector<8x32xbf16>, vector<32x96xbf16>, vector<8x96xf32> -> vector<8x96xf32>
    %192 = vector.broadcast %7 : vector<1x96xf32> to vector<8x96xf32>
    %193 = arith.addf %191, %192 : vector<8x96xf32>
    %194 = vector.extract_strided_slice %189 {offsets = [0, 0], sizes = [8, 32], strides = [1, 1]} : vector<8x96xf32> to vector<8x32xf32>
    %195 = vector.extract_strided_slice %193 {offsets = [0, 0], sizes = [8, 32], strides = [1, 1]} : vector<8x96xf32> to vector<8x32xf32>
    %196 = arith.addf %194, %195 : vector<8x32xf32>
    %197 = arith.negf %196 : vector<8x32xf32>
    %198 = math.exp %197 : vector<8x32xf32>
    %cst_35 = arith.constant 1.000000e+00 : f32
    %199 = vector.broadcast %cst_35 : f32 to vector<8x32xf32>
    %200 = arith.addf %199, %198 : vector<8x32xf32>
    %201 = arith.divf %199, %200 : vector<8x32xf32>
    %202 = vector.extract_strided_slice %189 {offsets = [0, 32], sizes = [8, 32], strides = [1, 1]} : vector<8x96xf32> to vector<8x32xf32>
    %203 = vector.extract_strided_slice %193 {offsets = [0, 32], sizes = [8, 32], strides = [1, 1]} : vector<8x96xf32> to vector<8x32xf32>
    %204 = arith.addf %202, %203 : vector<8x32xf32>
    %205 = arith.negf %204 : vector<8x32xf32>
    %206 = math.exp %205 : vector<8x32xf32>
    %cst_36 = arith.constant 1.000000e+00 : f32
    %207 = vector.broadcast %cst_36 : f32 to vector<8x32xf32>
    %208 = arith.addf %207, %206 : vector<8x32xf32>
    %209 = arith.divf %207, %208 : vector<8x32xf32>
    %210 = vector.extract_strided_slice %189 {offsets = [0, 64], sizes = [8, 32], strides = [1, 1]} : vector<8x96xf32> to vector<8x32xf32>
    %211 = vector.extract_strided_slice %193 {offsets = [0, 64], sizes = [8, 32], strides = [1, 1]} : vector<8x96xf32> to vector<8x32xf32>
    %212 = arith.mulf %201, %211 : vector<8x32xf32>
    %213 = arith.addf %210, %212 : vector<8x32xf32>
    %214 = math.tanh %213 : vector<8x32xf32>
    %cst_37 = arith.constant 1.000000e+00 : f32
    %215 = vector.broadcast %cst_37 : f32 to vector<8x32xf32>
    %216 = arith.subf %215, %209 : vector<8x32xf32>
    %217 = arith.mulf %216, %214 : vector<8x32xf32>
    %218 = arith.mulf %209, %176 : vector<8x32xf32>
    %219 = arith.addf %217, %218 : vector<8x32xf32>
    %c4_i32 = arith.constant 4 : i32
    %220 = vector.broadcast %c4_i32 : i32 to vector<8x1xi32>
    %221 = arith.cmpi sgt, %1, %220 : vector<8x1xi32>
    %222 = arith.extui %221 : vector<8x1xi1> to vector<8x1xi32>
    %223 = arith.sitofp %222 : vector<8x1xi32> to vector<8x1xf32>
    %224 = vector.broadcast %223 : vector<8x1xf32> to vector<8x32xf32>
    %225 = arith.mulf %224, %219 : vector<8x32xf32>
    %cst_38 = arith.constant 1.000000e+00 : f32
    %226 = vector.broadcast %cst_38 : f32 to vector<8x1xf32>
    %227 = arith.subf %226, %223 : vector<8x1xf32>
    %228 = vector.broadcast %227 : vector<8x1xf32> to vector<8x32xf32>
    %229 = arith.mulf %228, %187 : vector<8x32xf32>
    %230 = arith.addf %225, %229 : vector<8x32xf32>
    %231 = vector.extract_strided_slice %13 {offsets = [5, 0, 0], sizes = [1, 8, 96], strides = [1, 1, 1]} : vector<6x8x96xf32> to vector<1x8x96xf32>
    %232 = vector.shape_cast %231 : vector<1x8x96xf32> to vector<8x96xf32>
    %233 = arith.truncf %219 : vector<8x32xf32> to vector<8x32xbf16>
    %cst_39 = arith.constant dense<0.000000e+00> : vector<8x96xf32>
    %234 = tpu.matmul %233, %5, %cst_39 {dimension_numbers = #tpu.dot_dimension_numbers<[1], [0], [0], [1], [0, 0, 1, 1], [], []>} : vector<8x32xbf16>, vector<32x96xbf16>, vector<8x96xf32> -> vector<8x96xf32>
    %235 = vector.broadcast %7 : vector<1x96xf32> to vector<8x96xf32>
    %236 = arith.addf %234, %235 : vector<8x96xf32>
    %237 = vector.extract_strided_slice %232 {offsets = [0, 0], sizes = [8, 32], strides = [1, 1]} : vector<8x96xf32> to vector<8x32xf32>
    %238 = vector.extract_strided_slice %236 {offsets = [0, 0], sizes = [8, 32], strides = [1, 1]} : vector<8x96xf32> to vector<8x32xf32>
    %239 = arith.addf %237, %238 : vector<8x32xf32>
    %240 = arith.negf %239 : vector<8x32xf32>
    %241 = math.exp %240 : vector<8x32xf32>
    %cst_40 = arith.constant 1.000000e+00 : f32
    %242 = vector.broadcast %cst_40 : f32 to vector<8x32xf32>
    %243 = arith.addf %242, %241 : vector<8x32xf32>
    %244 = arith.divf %242, %243 : vector<8x32xf32>
    %245 = vector.extract_strided_slice %232 {offsets = [0, 32], sizes = [8, 32], strides = [1, 1]} : vector<8x96xf32> to vector<8x32xf32>
    %246 = vector.extract_strided_slice %236 {offsets = [0, 32], sizes = [8, 32], strides = [1, 1]} : vector<8x96xf32> to vector<8x32xf32>
    %247 = arith.addf %245, %246 : vector<8x32xf32>
    %248 = arith.negf %247 : vector<8x32xf32>
    %249 = math.exp %248 : vector<8x32xf32>
    %cst_41 = arith.constant 1.000000e+00 : f32
    %250 = vector.broadcast %cst_41 : f32 to vector<8x32xf32>
    %251 = arith.addf %250, %249 : vector<8x32xf32>
    %252 = arith.divf %250, %251 : vector<8x32xf32>
    %253 = vector.extract_strided_slice %232 {offsets = [0, 64], sizes = [8, 32], strides = [1, 1]} : vector<8x96xf32> to vector<8x32xf32>
    %254 = vector.extract_strided_slice %236 {offsets = [0, 64], sizes = [8, 32], strides = [1, 1]} : vector<8x96xf32> to vector<8x32xf32>
    %255 = arith.mulf %244, %254 : vector<8x32xf32>
    %256 = arith.addf %253, %255 : vector<8x32xf32>
    %257 = math.tanh %256 : vector<8x32xf32>
    %cst_42 = arith.constant 1.000000e+00 : f32
    %258 = vector.broadcast %cst_42 : f32 to vector<8x32xf32>
    %259 = arith.subf %258, %252 : vector<8x32xf32>
    %260 = arith.mulf %259, %257 : vector<8x32xf32>
    %261 = arith.mulf %252, %219 : vector<8x32xf32>
    %262 = arith.addf %260, %261 : vector<8x32xf32>
    %c5_i32 = arith.constant 5 : i32
    %263 = vector.broadcast %c5_i32 : i32 to vector<8x1xi32>
    %264 = arith.cmpi sgt, %1, %263 : vector<8x1xi32>
    %265 = arith.extui %264 : vector<8x1xi1> to vector<8x1xi32>
    %266 = arith.sitofp %265 : vector<8x1xi32> to vector<8x1xf32>
    %267 = vector.broadcast %266 : vector<8x1xf32> to vector<8x32xf32>
    %268 = arith.mulf %267, %262 : vector<8x32xf32>
    %cst_43 = arith.constant 1.000000e+00 : f32
    %269 = vector.broadcast %cst_43 : f32 to vector<8x1xf32>
    %270 = arith.subf %269, %266 : vector<8x1xf32>
    %271 = vector.broadcast %270 : vector<8x1xf32> to vector<8x32xf32>
    %272 = arith.mulf %271, %230 : vector<8x32xf32>
    %273 = arith.addf %268, %272 : vector<8x32xf32>
    %c0_44 = arith.constant 0 : index
    %c0_45 = arith.constant 0 : index
    %274 = vector.load %arg6[%c0_44, %c0_45] : memref<8x32xf32, #tpu.memory_space<vmem>>, vector<8x32xf32>
    tpu.vector_store %arg6[%c0_44, %c0_45], %273 {strides = array<i32>} : memref<8x32xf32, #tpu.memory_space<vmem>>, vector<8x32xf32>,
    return
  }
}

</mosaic_0001>

<bundles_post_ra>
// kernel: tpu_custom_call.1
= control target key start
LH: loop header
LB: loop body
LE: loop exit
PB: predicated region body
PF: predicated region fallthrough
CT: control target
= control target key end

     0   :  { %11 = vsyncpa [#allocation3], 0  ;;  %s942_s0 = inlined_call_operand.hbm [shape: f32[6,8,16], index: 0, kind: input, shape index: {}]   ;;  %s943_s1 = inlined_call_operand.vmem [shape: s32[8,1], index: 1, kind: input, shape index: {}]   ;;  %s944_s2 = inlined_call_operand.hbm [shape: f32[16,96], index: 2, kind: input, shape index: {}]   ;;  %s945_s3 = inlined_call_operand.hbm [shape: f32[32,96], index: 3, kind: input, shape index: {}]   ;;  %s946_s4 = inlined_call_operand.vmem [shape: f32[1,96], index: 4, kind: input, shape index: {}]   ;;  %s947_s5 = inlined_call_operand.vmem [shape: f32[1,96], index: 5, kind: input, shape index: {}]   ;;  %s948_s6 = inlined_call_operand.hbm [shape: f32[8,32], index: 6, kind: output, shape index: {}]  }
   0x1   :  { %12 = vsyncpa [#allocation6], 0 }
   0x2   :  { %13 = vsyncpa [#allocation4], 0  ;;  %s33_s23 = sshll.u32 %s944_s2, 4  ;;  %s797_s24 = smov [#allocation5]   ;;  %s34_s23 = int_to_ptr.hbm [resolvable:$true] %s33_s23 }
   0x3   :  { %s35_s25 = sshll.u32 %s797_s24, 4  ;;  %s18_s28 = sshll.u32 %s942_s0, 4  ;;  %s36_s25 = int_to_ptr.vmem [resolvable:$true] %s35_s25  ;;  %s19_s28 = int_to_ptr.hbm [resolvable:$true] %s18_s28 }
   0x4   :  { %s798_s29 = smov 128   ;;  %s799_s30 = smov 8  }
   0x5   :  { %41 = dma.hbm_to_vmem [thread:$0]  %s34_s23, 256, %s36_s25, [#allocation6], %s798_s29, %s798_s29, %s799_s30  }
   0x6   :  { %s800_s7 = smov [#allocation2]   ;;  %s46_s11 = sshll.u32 %s945_s3, 4  ;;  %s47_s11 = int_to_ptr.hbm [resolvable:$true] %s46_s11 }
   0x7   :  { %s20_s8 = sshll.u32 %s800_s7, 4  ;;  %s801_s2 = smov [#allocation7]   ;;  %s21_s8 = int_to_ptr.vmem [resolvable:$true] %s20_s8 }
   0x8   :  { %26 = dma.hbm_to_vmem [thread:$0]  %s19_s28, 768, %s21_s8, [#allocation3], %s798_s29, %s798_s29, %s799_s30  }
   0x9   :  { %s48_s12 = sshll.u32 %s801_s2, 4  ;;  %s49_s12 = int_to_ptr.vmem [resolvable:$true] %s48_s12 }
   0xa   :  { %54 = dma.hbm_to_vmem [thread:$0]  %s47_s11, 512, %s49_s12, [#allocation6], %s798_s29, %s798_s29, %s799_s30  }
   0xb   :  { %791 = dma.done.wait [#allocation3], 768  }
   0xc   :  { %792 = vsyncadd [#allocation3], 4294966528 }
   0xd   :  { %793 = dma.done.wait [#allocation6], 768  }
   0xe   :  { %794 = vsyncadd [#allocation6], 4294966528  ;;  %v802_v0 = vmov 0   ;;  %v84_v1 = vld [vmem:[#allocation7 + $0x10] sm:$0xff]  ;;  %v85_v2 = vld [vmem:[#allocation7 + $0x18] sm:$0xff]  ;;  %vm96_vm0 = vcmask 130048  }
   0xf   :  { %639 = vset.pattern.permute.xlu1 %v802_v0  ;;  %645 = vset.pattern.permute.xlu2 %v802_v0  ;;  %v79_v3 = vld [vmem:[#allocation5] sm:$0xff]  ;;  %v87_v4 = vpack.c.bf16 %v85_v2, %v84_v1  ;;  %v80_v5 = vld [vmem:[#allocation5 + $0x8] sm:$0xff]  ;;  %v82_v6 = vld [vmem:[#allocation7] sm:$0xff]  ;;  %s803_s13 = smov 64   ;;  %vm133_vm5 = vcmask 261120   ;;  %s598_s20 = sshll.u32 %s948_s6, 4  ;;  %s599_s20 = int_to_ptr.hbm [resolvable:$true] %s598_s20 }
  0x10   :  { %646 = vset.pattern.permute.xlu0 %v802_v0  ;;  %v83_v7 = vld [vmem:[#allocation7 + $0x8] sm:$0xff]  ;;  %v81_v8 = vpack.c.bf16 %v80_v5, %v79_v3  ;;  %v72_v9 = vld [vmem:[#allocation2] sm:$0xff] }
  0x11   :  { %v73_v10 = vld [vmem:[#allocation2 + $0x8] sm:$0xff]  ;;  %143 = vmatpush.bf16.msra.mxu1 %v87_v4  ;;  %v86_v11 = vpack.c.bf16 %v83_v7, %v82_v6  ;;  %219 = vmatpush.bf16.msra.mxu2 %v87_v4  ;;  %v855_v13 = vld [vmem:[%s947_s5] ss:$0 sm:$0xff] }
  0x12   :  { %v90_v12 = vpack.c.bf16 %v73_v10, %v72_v9  ;;  %113 = vmatpush.bf16.msra.mxu0 %v81_v8  ;;  %295 = vmatpush.bf16.msra.mxu3 %v87_v4  ;;  %v862_v17 = vld [vmem:[%s946_s4] ss:$0 sm:$0xff]  ;;  %s804_s4 = smov 96  }
  0x15   :  { %144 = vmatpush.bf16.msra.mxu1 %v86_v11  ;;  %609 = vmatmul.msk.bf16.vlgmr.msra.gmra.mxu0 %vm96_vm0, %v90_v12  ;;  %v74_v12 = vld [vmem:[#allocation2 + $0x10] sm:$0xff] }
  0x16   :  { %220 = vmatpush.bf16.msra.mxu2 %v86_v11  ;;  %296 = vmatpush.bf16.msra.mxu3 %v86_v11 }
  0x18   :  { %145 = vmatmul.bf16.vlgmr.msra.gmra.mxu1 %v802_v0 }
  0x19   :  { %371 = vmatpush.bf16.msrb.mxu1 %v87_v4 }
  0x1a   :  { %447 = vmatpush.bf16.msrb.mxu2 %v87_v4  ;;  %523 = vmatpush.bf16.msrb.mxu3 %v87_v4 }
  0x1d   :  { %372 = vmatpush.bf16.msrb.mxu1 %v86_v11 }
  0x1e   :  { %448 = vmatpush.bf16.msrb.mxu2 %v86_v11  ;;  %524 = vmatpush.bf16.msrb.mxu3 %v86_v11 }
  0x92   :  { %v115_v18 = vpop.f32.mrf.mxu0 }
  0x93   :  { %v116_v19 = vadd.f32 %v862_v17, %v115_v18 }
  0x95   :  { %v146_v14 = vpop.f32.mrf.mxu1 }
  0x96   :  { %v147_v15 = vadd.f32 %v855_v13, %v146_v14  ;;  %v75_v14 = vld [vmem:[#allocation2 + $0x18] sm:$0xff] }
  0x98   :  { %171 = vrot.lane.b32.xlu0 %v147_v15, %s803_s13  ;;  %v150_v20 = vadd.f32 %v147_v15, %v116_v19  ;;  %v91_v15 = vpack.c.bf16 %v75_v14, %v74_v12 }
  0x9a   :  { %v612_v21 = vmul.f32 -1.442695, %v150_v20  ;;  %v117_v49 = vpop.f32.mrf.mxu0  ;;  %610 = vmatmul.msk.bf16.gmra.mxu0 %vm96_vm0, %v91_v15 }
  0x9b   :  { %v118_v50 = vadd.f32 %v862_v17, %v117_v49 }
  0x9c   :  { %659 = vpow2.f32 %v612_v21 }
  0x9d   :  { %v148_v16 = vpop.f32.mrf.mxu1 }
  0xa2   :  { %v660_v22 = vpop.eup %659 }
  0xa3   :  { %v154_v23 = vadd.f32 1.0, %v660_v22 }
  0xa5   :  { %661 = vrcp.f32 %v154_v23  ;;  %v166_v29 = vand.u32 2147483648, %v154_v23  ;;  %vm160_vm2 = vweird.f32 %v154_v23  ;;  %v164_v30 = vand.u32 2147483647, %v154_v23 }
  0xa7   :  { %v167_v32 = vor.u32 1.1754944e-38, %v166_v29  ;;  %vm165_vm4 = vcmp.eq.f32.partialorder %v164_v30, 8.507059e+37 }
  0xab   :  { %v662_v24 = vpop.eup %661 }
  0xac   :  { %v156_v25 = vmul.f32 %v662_v24, %v154_v23  ;;  %vm161_vm1 = vweird.f32 %v662_v24 }
  0xad   :  { %vm162_vm3 = vmor %vm160_vm2, %vm161_vm1 }
  0xae   :  { %v157_v26 = vsub.f32 1.0, %v156_v25 }
  0xb0   :  { %v158_v27 = vmul.f32 %v662_v24, %v157_v26 }
  0xb2   :  { %v159_v28 = vadd.f32 %v662_v24, %v158_v27 }
  0xb4   :  { %v163_v31 = vsel %vm162_vm3, %v662_v24, %v159_v28 }
  0xb5   :  { %v168_v34 = vsel %vm165_vm4, %v167_v32, %v163_v31 }
  0xb6   :  { %v181_v39 = vsub.f32 1.0, %v168_v34  ;;  %v187_v41 = vmul.f32 0.0, %v168_v34 }
 0x10a   :  { %v172_v33 = vpop.permute.xlu0 %171 }
 0x10b   :  { %v174_v35 = vmul.f32 %v172_v33, %v168_v34 }
 0x10d   :  { %176 = vrot.lane.b32.xlu0 %v174_v35, %s803_s13 }
 0x117   :  { %v120_v21 = vpop.f32.mrf.mxu0 }
 0x118   :  { %v121_v22 = vadd.f32 %v862_v17, %v120_v21 }
 0x17f   :  { %v177_v36 = vpop.permute.xlu0 %176 }
 0x180   :  { %v179_v37 = vadd.f32 %v177_v36, %v116_v19 }
 0x182   :  { %663 = vtanh.f32 %v179_v37 }
 0x188   :  { %v664_v38 = vpop.eup %663 }
 0x189   :  { %183 = vrot.lane.b32.xlu1 %v664_v38, %s804_s4 }
 0x1fb   :  { %v184_v40 = vpop.permute.xlu1 %183 }
 0x1fc   :  { %v186_v42 = vmul.f32 %v184_v40, %v181_v39 }
 0x1fe   :  { %v867_v43 = vadd.f32 %v187_v41, %v186_v42 }
 0x200   :  { %v206_v44 = vpack.c.bf16 %v867_v43, %v867_v43 }
 0x202   :  { %208 = vrot.lane.b32.xlu1 %v206_v44, %s804_s4 }
 0x274   :  { %v209_v45 = vpop.permute.xlu1 %208 }
 0x275   :  { %614 = vmatmul.msk.bf16.vlgmr.msra.gmra.mxu2 %vm133_vm5, %v209_v45 }
 0x2f8   :  { %v222_v46 = vpop.f32.mrf.mxu2 }
 0x2f9   :  { %v223_v47 = vadd.f32 %v855_v13, %v222_v46 }
 0x2fb   :  { %247 = vrot.lane.b32.xlu2 %v223_v47, %s803_s13  ;;  %v226_v51 = vadd.f32 %v223_v47, %v118_v50 }
 0x2fd   :  { %v615_v52 = vmul.f32 -1.442695, %v226_v51 }
 0x2ff   :  { %665 = vpow2.f32 %v615_v52 }
 0x300   :  { %v224_v48 = vpop.f32.mrf.mxu2 }
 0x305   :  { %v666_v53 = vpop.eup %665 }
 0x306   :  { %v230_v54 = vadd.f32 1.0, %v666_v53  ;;  %v122_v53 = vpop.f32.mrf.mxu0 }
 0x308   :  { %667 = vrcp.f32 %v230_v54  ;;  %v242_v60 = vand.u32 2147483648, %v230_v54  ;;  %vm236_vm7 = vweird.f32 %v230_v54  ;;  %v240_v61 = vand.u32 2147483647, %v230_v54 }
 0x30a   :  { %v243_v63 = vor.u32 1.1754944e-38, %v242_v60  ;;  %vm241_vm9 = vcmp.eq.f32.partialorder %v240_v61, 8.507059e+37 }
 0x30e   :  { %v668_v55 = vpop.eup %667 }
 0x30f   :  { %v232_v56 = vmul.f32 %v668_v55, %v230_v54  ;;  %vm237_vm6 = vweird.f32 %v668_v55  ;;  %v123_v54 = vadd.f32 %v862_v17, %v122_v53  ;;  %v78_v53 = vld [vmem:[%s943_s1] sm:$0xff]  ;;  %s806_s1 = smov [#allocation8]  }
 0x310   :  { %vm238_vm8 = vmor %vm236_vm7, %vm237_vm6  ;;  %vm189_vm7 = vcmp.gt.s32.totalorder %v78_v53, 0  ;;  %s596_s17 = sshll.u32 %s806_s1, 4  ;;  %s597_s17 = int_to_ptr.vmem [resolvable:$true] %s596_s17 }
 0x311   :  { %v233_v57 = vsub.f32 1.0, %v232_v56 }
 0x313   :  { %v234_v58 = vmul.f32 %v668_v55, %v233_v57 }
 0x315   :  { %v235_v59 = vadd.f32 %v668_v55, %v234_v58 }
 0x317   :  { %v239_v62 = vsel %vm238_vm8, %v668_v55, %v235_v59  ;;  %vm265_vm8 = vcmp.gt.s32.totalorder %v78_v53, 1 }
 0x318   :  { %v244_v1 = vsel %vm241_vm9, %v243_v63, %v239_v62  ;;  %vm341_vm9 = vcmp.gt.s32.totalorder %v78_v53, 2 }
 0x319   :  { %v257_v6 = vsub.f32 1.0, %v244_v1  ;;  %v263_v8 = vmul.f32 %v244_v1, %v867_v43 }
 0x355   :  { %v248_v0 = vpop.permute.xlu2 %247 }
 0x356   :  { %v250_v2 = vmul.f32 %v248_v0, %v244_v1 }
 0x358   :  { %252 = vrot.lane.b32.xlu2 %v250_v2, %s803_s13 }
 0x3b2   :  { %v253_v3 = vpop.permute.xlu2 %252 }
 0x3b3   :  { %v255_v4 = vadd.f32 %v253_v3, %v118_v50 }
 0x3b5   :  { %669 = vtanh.f32 %v255_v4 }
 0x3bb   :  { %v670_v5 = vpop.eup %669 }
 0x3bc   :  { %259 = vrot.lane.b32.xlu0 %v670_v5, %s804_s4 }
 0x42e   :  { %v260_v7 = vpop.permute.xlu0 %259 }
 0x42f   :  { %v262_v9 = vmul.f32 %v260_v7, %v257_v6 }
 0x431   :  { %v879_v10 = vadd.f32 %v263_v8, %v262_v9 }
 0x433   :  { %v282_v11 = vpack.c.bf16 %v879_v10, %v879_v10 }
 0x435   :  { %284 = vrot.lane.b32.xlu1 %v282_v11, %s804_s4 }
 0x4a7   :  { %v285_v16 = vpop.permute.xlu1 %284 }
 0x4a8   :  { %617 = vmatmul.msk.bf16.vlgmr.msra.gmra.mxu3 %vm133_vm5, %v285_v16 }
 0x52b   :  { %v298_v18 = vpop.f32.mrf.mxu3 }
 0x52c   :  { %v299_v19 = vadd.f32 %v855_v13, %v298_v18 }
 0x52e   :  { %323 = vrot.lane.b32.xlu2 %v299_v19, %s803_s13  ;;  %v302_v23 = vadd.f32 %v299_v19, %v121_v22  ;;  %v76_v19 = vld [vmem:[#allocation2 + $0x20] sm:$0xff] }
 0x530   :  { %v618_v24 = vmul.f32 -1.442695, %v302_v23 }
 0x532   :  { %671 = vpow2.f32 %v618_v24 }
 0x533   :  { %v300_v20 = vpop.f32.mrf.mxu3 }
 0x534   :  { %v77_v20 = vld [vmem:[#allocation2 + $0x28] sm:$0xff] }
 0x535   :  { %v92_v21 = vpack.c.bf16 %v77_v20, %v76_v19 }
 0x537   :  { %611 = vmatmul.msk.bf16.gmra.mxu0 %vm96_vm0, %v92_v21 }
 0x538   :  { %v672_v25 = vpop.eup %671 }
 0x539   :  { %v306_v26 = vadd.f32 1.0, %v672_v25 }
 0x53b   :  { %673 = vrcp.f32 %v306_v26  ;;  %v318_v32 = vand.u32 2147483648, %v306_v26  ;;  %vm312_vm11 = vweird.f32 %v306_v26  ;;  %v316_v33 = vand.u32 2147483647, %v306_v26 }
 0x53d   :  { %v319_v35 = vor.u32 1.1754944e-38, %v318_v32  ;;  %vm317_vm13 = vcmp.eq.f32.partialorder %v316_v33, 8.507059e+37 }
 0x541   :  { %v674_v27 = vpop.eup %673 }
 0x542   :  { %v308_v28 = vmul.f32 %v674_v27, %v306_v26  ;;  %vm313_vm10 = vweird.f32 %v674_v27 }
 0x543   :  { %vm314_vm12 = vmor %vm312_vm11, %vm313_vm10  ;;  %vm417_vm10 = vcmp.gt.s32.totalorder %v78_v53, 3  ;;  %vm493_vm11 = vcmp.gt.s32.totalorder %v78_v53, 4 }
 0x544   :  { %v309_v29 = vsub.f32 1.0, %v308_v28 }
 0x546   :  { %v310_v30 = vmul.f32 %v674_v27, %v309_v29 }
 0x548   :  { %v311_v31 = vadd.f32 %v674_v27, %v310_v30 }
 0x54a   :  { %v315_v34 = vsel %vm314_vm12, %v674_v27, %v311_v31  ;;  %vm569_vm12 = vcmp.gt.s32.totalorder %v78_v53, 5 }
 0x54b   :  { %v320_v37 = vsel %vm317_vm13, %v319_v35, %v315_v34 }
 0x54c   :  { %v333_v42 = vsub.f32 1.0, %v320_v37  ;;  %v339_v45 = vmul.f32 %v320_v37, %v879_v10 }
 0x588   :  { %v324_v36 = vpop.permute.xlu2 %323 }
 0x589   :  { %v326_v38 = vmul.f32 %v324_v36, %v320_v37 }
 0x58b   :  { %328 = vrot.lane.b32.xlu0 %v326_v38, %s803_s13 }
 0x5b4   :  { %v125_v26 = vpop.f32.mrf.mxu0 }
 0x5b5   :  { %v126_v27 = vadd.f32 %v862_v17, %v125_v26 }
 0x5fd   :  { %v329_v39 = vpop.permute.xlu0 %328 }
 0x5fe   :  { %v331_v40 = vadd.f32 %v329_v39, %v121_v22 }
 0x600   :  { %675 = vtanh.f32 %v331_v40 }
 0x606   :  { %v676_v41 = vpop.eup %675 }
 0x607   :  { %335 = vrot.lane.b32.xlu1 %v676_v41, %s804_s4 }
 0x679   :  { %v336_v44 = vpop.permute.xlu1 %335 }
 0x67a   :  { %v338_v46 = vmul.f32 %v336_v44, %v333_v42 }
 0x67c   :  { %v892_v47 = vadd.f32 %v339_v45, %v338_v46 }
 0x67e   :  { %v358_v48 = vpack.c.bf16 %v892_v47, %v892_v47 }
 0x680   :  { %360 = vrot.lane.b32.xlu2 %v358_v48, %s804_s4 }
 0x6da   :  { %v361_v49 = vpop.permute.xlu2 %360 }
 0x6db   :  { %620 = vmatmul.msk.bf16.vlgmr.msrb.gmra.mxu1 %vm133_vm5, %v361_v49 }
 0x758   :  { %v374_v50 = vpop.f32.mrf.mxu1 }
 0x759   :  { %v375_v51 = vadd.f32 %v855_v13, %v374_v50 }
 0x75b   :  { %399 = vrot.lane.b32.xlu0 %v375_v51, %s803_s13  ;;  %v378_v55 = vadd.f32 %v375_v51, %v123_v54 }
 0x75d   :  { %v621_v56 = vmul.f32 -1.442695, %v378_v55 }
 0x75f   :  { %677 = vpow2.f32 %v621_v56  ;;  %v805_v56 = vmov 0.0  }
 0x760   :  { %v376_v52 = vpop.f32.mrf.mxu1 }
 0x765   :  { %v678_v57 = vpop.eup %677 }
 0x766   :  { %v382_v58 = vadd.f32 1.0, %v678_v57  ;;  %v613_v57 = vsel %vm189_vm7, 1.0, %v805_v56 }
 0x768   :  { %679 = vrcp.f32 %v382_v58  ;;  %v394_v0 = vand.u32 2147483648, %v382_v58  ;;  %vm388_vm15 = vweird.f32 %v382_v58  ;;  %v392_v1 = vand.u32 2147483647, %v382_v58 }
 0x76a   :  { %v395_v3 = vor.u32 1.1754944e-38, %v394_v0  ;;  %vm393_vm2 = vcmp.eq.f32.partialorder %v392_v1, 8.507059e+37 }
 0x76e   :  { %v680_v59 = vpop.eup %679 }
 0x76f   :  { %v384_v60 = vmul.f32 %v680_v59, %v382_v58  ;;  %vm389_vm14 = vweird.f32 %v680_v59  ;;  %v616_v58 = vsel %vm265_vm8, 1.0, %v805_v56 }
 0x770   :  { %vm390_vm1 = vmor %vm388_vm15, %vm389_vm14 }
 0x771   :  { %v385_v61 = vsub.f32 1.0, %v384_v60  ;;  %v619_v60 = vsel %vm341_vm9, 1.0, %v805_v56 }
 0x773   :  { %v386_v62 = vmul.f32 %v680_v59, %v385_v61  ;;  %v622_v61 = vsel %vm417_vm10, 1.0, %v805_v56 }
 0x774   :  { %v426_v19 = vsub.f32 1.0, %v622_v61 }
 0x775   :  { %v387_v63 = vadd.f32 %v680_v59, %v386_v62  ;;  %v647_v62 = vpack.i.bf16 %v622_v61, %v619_v60 }
 0x777   :  { %v391_v2 = vsel %vm390_vm1, %v680_v59, %v387_v63  ;;  %v640_v59 = vpack.i.bf16 %v616_v58, %v613_v57 }
 0x778   :  { %v396_v5 = vsel %vm393_vm2, %v395_v3, %v391_v2  ;;  %v198_v2 = vsub.f32 1.0, %v613_v57 }
 0x779   :  { %v409_v11 = vsub.f32 1.0, %v396_v5  ;;  %v415_v14 = vmul.f32 %v396_v5, %v892_v47 }
 0x7cd   :  { %v400_v4 = vpop.permute.xlu0 %399 }
 0x7ce   :  { %v402_v6 = vmul.f32 %v400_v4, %v396_v5  ;;  %v350_v4 = vsub.f32 1.0, %v619_v60  ;;  %v625_v5 = vsel %vm493_vm11, 1.0, %v805_v56 }
 0x7d0   :  { %404 = vrot.lane.b32.xlu1 %v402_v6, %s803_s13  ;;  %v628_v6 = vsel %vm569_vm12, 1.0, %v805_v56 }
 0x842   :  { %v405_v7 = vpop.permute.xlu1 %404 }
 0x843   :  { %v407_v8 = vadd.f32 %v405_v7, %v123_v54  ;;  %v652_v7 = vpack.i.bf16 %v628_v6, %v625_v5 }
 0x845   :  { %681 = vtanh.f32 %v407_v8  ;;  %v127_v8 = vpop.f32.mrf.mxu0 }
 0x84b   :  { %v682_v9 = vpop.eup %681 }
 0x84c   :  { %411 = vrot.lane.b32.xlu2 %v682_v9, %s804_s4  ;;  %v128_v9 = vadd.f32 %v862_v17, %v127_v8 }
 0x8a6   :  { %v412_v12 = vpop.permute.xlu2 %411 }
 0x8a7   :  { %v414_v15 = vmul.f32 %v412_v12, %v409_v11 }
 0x8a9   :  { %v904_v16 = vadd.f32 %v415_v14, %v414_v15 }
 0x8ab   :  { %v434_v18 = vpack.c.bf16 %v904_v16, %v904_v16 }
 0x8ad   :  { %436 = vrot.lane.b32.xlu0 %v434_v18, %s804_s4 }
 0x91f   :  { %v437_v22 = vpop.permute.xlu0 %436 }
 0x920   :  { %623 = vmatmul.msk.bf16.vlgmr.msrb.gmra.mxu2 %vm133_vm5, %v437_v22 }
 0x9a3   :  { %v450_v23 = vpop.f32.mrf.mxu2 }
 0x9a4   :  { %v451_v24 = vadd.f32 %v855_v13, %v450_v23 }
 0x9a6   :  { %475 = vrot.lane.b32.xlu1 %v451_v24, %s803_s13  ;;  %v454_v28 = vadd.f32 %v451_v24, %v126_v27 }
 0x9a8   :  { %v624_v29 = vmul.f32 -1.442695, %v454_v28 }
 0x9aa   :  { %683 = vpow2.f32 %v624_v29 }
 0x9ab   :  { %v452_v25 = vpop.f32.mrf.mxu2 }
 0x9ac   :  { %v578_v25 = vsub.f32 1.0, %v628_v6 }
 0x9b0   :  { %v684_v30 = vpop.eup %683 }
 0x9b1   :  { %v458_v31 = vadd.f32 1.0, %v684_v30  ;;  %v274_v30 = vsub.f32 1.0, %v616_v58 }
 0x9b3   :  { %685 = vrcp.f32 %v458_v31  ;;  %v470_v37 = vand.u32 2147483648, %v458_v31  ;;  %vm464_vm3 = vweird.f32 %v458_v31  ;;  %v468_v38 = vand.u32 2147483647, %v458_v31 }
 0x9b5   :  { %v471_v40 = vor.u32 1.1754944e-38, %v470_v37  ;;  %vm469_vm6 = vcmp.eq.f32.partialorder %v468_v38, 8.507059e+37 }
 0x9b9   :  { %v686_v32 = vpop.eup %685 }
 0x9ba   :  { %v460_v33 = vmul.f32 %v686_v32, %v458_v31  ;;  %vm465_vm0 = vweird.f32 %v686_v32  ;;  %v502_v31 = vsub.f32 1.0, %v625_v5 }
 0x9bb   :  { %vm466_vm4 = vmor %vm464_vm3, %vm465_vm0 }
 0x9bc   :  { %v461_v34 = vsub.f32 1.0, %v460_v33 }
 0x9be   :  { %v462_v35 = vmul.f32 %v686_v32, %v461_v34 }
 0x9c0   :  { %v463_v36 = vadd.f32 %v686_v32, %v462_v35 }
 0x9c2   :  { %v467_v39 = vsel %vm466_vm4, %v686_v32, %v463_v36 }
 0x9c3   :  { %v472_v42 = vsel %vm469_vm6, %v471_v40, %v467_v39 }
 0x9c4   :  { %v485_v49 = vsub.f32 1.0, %v472_v42  ;;  %v491_v51 = vmul.f32 %v472_v42, %v904_v16 }
 0xa18   :  { %v476_v41 = vpop.permute.xlu1 %475 }
 0xa19   :  { %v478_v44 = vmul.f32 %v476_v41, %v472_v42 }
 0xa1b   :  { %480 = vrot.lane.b32.xlu2 %v478_v44, %s803_s13 }
 0xa75   :  { %v481_v45 = vpop.permute.xlu2 %480 }
 0xa76   :  { %v483_v46 = vadd.f32 %v481_v45, %v126_v27 }
 0xa78   :  { %687 = vtanh.f32 %v483_v46 }
 0xa7e   :  { %v688_v48 = vpop.eup %687 }
 0xa7f   :  { %487 = vrot.lane.b32.xlu0 %v688_v48, %s804_s4 }
 0xaf1   :  { %v488_v50 = vpop.permute.xlu0 %487 }
 0xaf2   :  { %v490_v52 = vmul.f32 %v488_v50, %v485_v49 }
 0xaf4   :  { %v920_v54 = vadd.f32 %v491_v51, %v490_v52 }
 0xaf6   :  { %v510_v55 = vpack.c.bf16 %v920_v54, %v920_v54 }
 0xaf8   :  { %512 = vrot.lane.b32.xlu1 %v510_v55, %s804_s4 }
 0xb00   :  { %641 = vperm.xlu1 %639, %v640_v59  }
 0xb08   :  { %648 = vperm.xlu1 %639, %v647_v62  }
 0xb10   :  { %429 = vperm.xlu1 %639, %v426_v19  }
 0xb6a   :  { %v513_v63 = vpop.permute.xlu1 %512 }
 0xb6b   :  { %626 = vmatmul.msk.bf16.vlgmr.msrb.gmra.mxu3 %vm133_vm5, %v513_v63 }
 0xb72   :  { %v642_v35 = vpop.permute.xlu1 %641 }
 0xb73   :  { %v643_v37 = vunpack.i.l.bf16 %v642_v35  ;;  %v644_v41 = vunpack.i.h.bf16 %v642_v35 }
 0xb75   :  { %v197_v39 = vmul.f32 %v643_v37, %v867_v43  ;;  %v273_v45 = vmul.f32 %v644_v41, %v879_v10 }
 0xb7a   :  { %v649_v46 = vpop.permute.xlu1 %648 }
 0xb7b   :  { %v650_v49 = vunpack.i.l.bf16 %v649_v46  ;;  %v651_v56 = vunpack.i.h.bf16 %v649_v46 }
 0xb7d   :  { %v349_v52 = vmul.f32 %v650_v49, %v892_v47  ;;  %v425_v58 = vmul.f32 %v651_v56, %v904_v16 }
 0xb82   :  { %v430_v55 = vpop.permute.xlu1 %429 }
 0xbee   :  { %v526_v0 = vpop.f32.mrf.mxu3 }
 0xbef   :  { %v527_v1 = vadd.f32 %v855_v13, %v526_v0 }
 0xbf1   :  { %551 = vrot.lane.b32.xlu2 %v527_v1, %s803_s13  ;;  %v530_v11 = vadd.f32 %v527_v1, %v128_v9 }
 0xbf3   :  { %v627_v12 = vmul.f32 -1.442695, %v530_v11 }
 0xbf5   :  { %689 = vpow2.f32 %v627_v12 }
 0xbf6   :  { %v528_v3 = vpop.f32.mrf.mxu3 }
 0xbf9   :  { %201 = vperm.xlu2 %645, %v198_v2  }
 0xbfb   :  { %v690_v13 = vpop.eup %689 }
 0xbfc   :  { %v534_v14 = vadd.f32 1.0, %v690_v13 }
 0xbfe   :  { %691 = vrcp.f32 %v534_v14  ;;  %v546_v23 = vand.u32 2147483648, %v534_v14  ;;  %vm540_vm14 = vweird.f32 %v534_v14  ;;  %v544_v24 = vand.u32 2147483647, %v534_v14 }
 0xc00   :  { %v547_v26 = vor.u32 1.1754944e-38, %v546_v23  ;;  %vm545_vm1 = vcmp.eq.f32.partialorder %v544_v24, 8.507059e+37 }
 0xc01   :  { %353 = vperm.xlu2 %645, %v350_v4  }
 0xc04   :  { %v692_v15 = vpop.eup %691 }
 0xc05   :  { %v536_v18 = vmul.f32 %v692_v15, %v534_v14  ;;  %vm541_vm13 = vweird.f32 %v692_v15 }
 0xc06   :  { %vm542_vm15 = vmor %vm540_vm14, %vm541_vm13 }
 0xc07   :  { %v537_v20 = vsub.f32 1.0, %v536_v18 }
 0xc09   :  { %653 = vperm.xlu2 %645, %v652_v7   ;;  %v538_v21 = vmul.f32 %v692_v15, %v537_v20 }
 0xc0b   :  { %v539_v22 = vadd.f32 %v692_v15, %v538_v21 }
 0xc0d   :  { %v543_v17 = vsel %vm542_vm15, %v692_v15, %v539_v22 }
 0xc0e   :  { %v548_v28 = vsel %vm545_vm1, %v547_v26, %v543_v17 }
 0xc0f   :  { %v561_v63 = vsub.f32 1.0, %v548_v28  ;;  %v567_v2 = vmul.f32 %v548_v28, %v920_v54 }
 0xc11   :  { %581 = vperm.xlu2 %645, %v578_v25  }
 0xc4b   :  { %v552_v27 = vpop.permute.xlu2 %551 }
 0xc4c   :  { %v554_v29 = vmul.f32 %v552_v27, %v548_v28 }
 0xc4e   :  { %556 = vrot.lane.b32.xlu0 %v554_v29, %s803_s13 }
 0xc53   :  { %v202_v36 = vpop.permute.xlu2 %201 }
 0xc54   :  { %v204_v38 = vmul.f32 0.0, %v202_v36 }
 0xc56   :  { %277 = vperm.xlu0 %646, %v274_v30   ;;  %v205_v42 = vadd.f32 %v204_v38, %v197_v39 }
 0xc5b   :  { %v354_v50 = vpop.permute.xlu2 %353 }
 0xc5e   :  { %505 = vperm.xlu0 %646, %v502_v31  }
 0xc63   :  { %v654_v43 = vpop.permute.xlu2 %653 }
 0xc64   :  { %v655_v61 = vunpack.i.l.bf16 %v654_v43  ;;  %v656_v4 = vunpack.i.h.bf16 %v654_v43 }
 0xc66   :  { %v501_v10 = vmul.f32 %v655_v61, %v920_v54 }
 0xc6b   :  { %v582_v47 = vpop.permute.xlu2 %581 }
 0xcc0   :  { %v557_v32 = vpop.permute.xlu0 %556 }
 0xcc1   :  { %v559_v33 = vadd.f32 %v557_v32, %v128_v9 }
 0xcc3   :  { %693 = vtanh.f32 %v559_v33 }
 0xcc8   :  { %v278_v40 = vpop.permute.xlu0 %277 }
 0xcc9   :  { %v694_v34 = vpop.eup %693  ;;  %v280_v44 = vmul.f32 %v278_v40, %v205_v42 }
 0xcca   :  { %563 = vrot.lane.b32.xlu1 %v694_v34, %s804_s4 }
 0xccb   :  { %v281_v48 = vadd.f32 %v280_v44, %v273_v45 }
 0xccd   :  { %v356_v51 = vmul.f32 %v354_v50, %v281_v48 }
 0xccf   :  { %v357_v53 = vadd.f32 %v356_v51, %v349_v52 }
 0xcd0   :  { %v506_v60 = vpop.permute.xlu0 %505 }
 0xcd1   :  { %v432_v57 = vmul.f32 %v430_v55, %v357_v53 }
 0xcd3   :  { %v433_v59 = vadd.f32 %v432_v57, %v425_v58 }
 0xcd5   :  { %v508_v62 = vmul.f32 %v506_v60, %v433_v59 }
 0xcd7   :  { %v509_v1 = vadd.f32 %v508_v62, %v501_v10 }
 0xcd9   :  { %v584_v6 = vmul.f32 %v582_v47, %v509_v1 }
 0xd3c   :  { %v564_v0 = vpop.permute.xlu1 %563 }
 0xd3d   :  { %v566_v3 = vmul.f32 %v564_v0, %v561_v63 }
 0xd3f   :  { %v568_v5 = vadd.f32 %v567_v2, %v566_v3 }
 0xd41   :  { %v577_v7 = vmul.f32 %v656_v4, %v568_v5 }
 0xd43   :  { %v585_v8 = vadd.f32 %v584_v6, %v577_v7 }
 0xd45   :  { %587 = vrot.lane.b32.xlu0 %v585_v8, %s804_s4 }
 0xdb7   :  { %v588_v16 = vpop.permute.xlu0 %587 }
 0xdb8   :  { %590 = vst.msk [vmem:[#allocation8] sm:$0xff] %vm133_vm5, %v588_v16 }
 0xdb9   :  { %601 = dma.vmem_to_hbm [thread:$0]  %s597_s17, 128, %s599_s20, [#allocation4]  }
 0xdba   :  { %795 = dma.done.wait [#allocation4], 128  }
 0xdbb   :  { %796 = vsyncadd [#allocation4], 4294967168 }
 0xdbc   :  { %606 = vsyncpa [#allocation3], 1 }
 0xdbd   :  { %607 = vsyncpa [#allocation6], 1 }
 0xdbe   :  { %608 = vsyncpa [#allocation4], 1 }

</bundles_post_ra>
